<compile_context>
chip_gen: v5e
topology: v5e:2x2
jax: 0.10.0
libtpu: 0.0.40
codegen_flags: <defaults>
</compile_context>

<pallas_src>
import functools

import jax
import jax.numpy as jnp
from jax import lax
from jax.experimental import pallas as pl
from jax.experimental.pallas import tpu as pltpu

NEG_SLOPE = 0.01  # nn.LeakyReLU default negative_slope


def _leaky_relu(x):
    return jnp.where(x > 0, x, NEG_SLOPE * x)


def _tcn_kernel(xc_ref, xp_ref, w_ref, b_ref, rd_ref, rb_ref, o_ref, *,
                nl, k, dilation, tl, halo, slab, cmax, cin0, cout_last, ds_pos):
    """Fused TCN forward for one (batch, L-tile) grid cell.

    xc_ref : (cin0, tl)              current input tile (NCL layout, L on lanes)
    xp_ref : (cin0, slab)            last `slab` columns of the previous tile (halo source)
    w_ref  : (nl*k, cmax, cmax)      per-layer, per-tap conv weights (weight-normalized, padded)
    b_ref  : (nl, cmax, 1)           conv biases
    rd_ref : (n_ds, cmax, cmax)      packed 1x1 downsample weights (only for layers needing one)
    rb_ref : (n_ds, cmax, 1)         downsample biases
    o_ref  : (cout_last, tl)         final-layer output tile
    """
    lt = pl.program_id(1)
    bufw = tl + halo

    xc = xc_ref[...].astype(jnp.float32)                       # (cin0, tl)
    if halo > 0:
        hleft = xp_ref[:, slab - halo:].astype(jnp.float32)    # (cin0, halo)
        h = jnp.concatenate([hleft, xc], axis=1)               # (cin0, bufw)
    else:
        h = xc
    if cmax > cin0:
        h = jnp.concatenate(
            [h, jnp.zeros((cmax - cin0, bufw), jnp.float32)], axis=0)   # (cmax, bufw)

    # Buffer column c holds sequence position lt*tl - halo + c. Columns before position 0
    # must act as each layer's causal zero pad -> mask them to zero before EVERY layer.
    # (Interior tiles: start == 0, the mask is a no-op and real halo data flows through.)
    col = lax.broadcasted_iota(jnp.int32, (cmax, bufw), 1)      # hoisted (no per-layer iota)
    start = jnp.maximum(halo - lt * tl, 0)
    keep = col >= start

    # Static unroll over layers; activations stay in VMEM/vregs for the whole stack.
    for l in range(nl):
        h = jnp.where(keep, h, 0.0)

        # Causal conv as k accumulating matmuls (no merged-xt concat). Tap j multiplies the
        # input shifted right by (k-1-j)*dilation (== PyTorch conv + left pad + chomp).
        conv = jnp.dot(w_ref[l * k + (k - 1)], h,
                       preferred_element_type=jnp.float32)      # s == 0 tap
        for j in range(k - 1):
            s = (k - 1 - j) * dilation
            tap = jnp.concatenate(
                [jnp.zeros((cmax, s), jnp.float32), h[:, :bufw - s]], axis=1)
            conv = conv + jnp.dot(w_ref[l * k + j], tap,
                                  preferred_element_type=jnp.float32)
        conv = conv + b_ref[l]
        out1 = _leaky_relu(conv)                                # relu1 (dropout == identity)

        if ds_pos[l] >= 0:                                      # 1x1 downsample residual
            pidx = ds_pos[l]
            res = jnp.dot(rd_ref[pidx], h,
                          preferred_element_type=jnp.float32) + rb_ref[pidx]
        else:                                                   # identity residual: no matmul
            res = h
        h = _leaky_relu(out1 + res)                             # block output (cmax, bufw)

    o_ref[...] = h[:cout_last, halo:].astype(o_ref.dtype)


# ------------------------- parameter packing -------------------------

def _pack_params(params, num_inputs, kernel_size):
    """Pad channels to a sublane-friendly width; stack per-layer/per-tap weights."""
    nl = len(params)
    k = kernel_size
    chans = [num_inputs] + [w.shape[0] for (w, _, _, _) in params]
    cmax = ((max(chans) + 7) // 8) * 8
    w_all = jnp.zeros((nl * k, cmax, cmax), jnp.float32)
    b_all = jnp.zeros((nl, cmax, 1), jnp.float32)
    ds_pos = []
    rd_list, rb_list = [], []
    for l, (w, b, wd, bd) in enumerate(params):
        cout, cin, _ = w.shape
        for j in range(k):
            w_all = w_all.at[l * k + j, :cout, :cin].set(w[:, :, j])
        b_all = b_all.at[l, :cout, 0].set(b)
        if wd is None:
            ds_pos.append(-1)
        else:
            ds_pos.append(len(rd_list))
            rd_list.append(jnp.zeros((cmax, cmax), jnp.float32).at[:cout, :cin].set(wd))
            rb_list.append(jnp.zeros((cmax, 1), jnp.float32).at[:cout, 0].set(bd))
    if rd_list:
        rd_all = jnp.stack(rd_list)
        rb_all = jnp.stack(rb_list)
    else:                                    # dummy (never read)
        rd_all = jnp.zeros((1, cmax, cmax), jnp.float32)
        rb_all = jnp.zeros((1, cmax, 1), jnp.float32)
    return w_all, b_all, rd_all, rb_all, cmax, chans[-1], tuple(ds_pos)


def temporal_conv_net(x, params, *, kernel_size, dilation, tl=None):
    """x: (N, C, L) like the PyTorch module. Returns (N, C_last, L)."""
    N, cin0, L = x.shape
    nl = len(params)
    k = kernel_size
    halo = nl * (k - 1) * dilation                  # receptive-field halo across the stack
    (w_all, b_all, rd_all, rb_all,
     cmax, cout_last, ds_pos) = _pack_params(params, cin0, k)

    if tl is None:
        # Prefer the largest lane-dense tile that fits a conservative VMEM activation budget
        # (amortizes ~0.35us/grid-step overhead and per-step weight reads).
        tl = L
        budget = 8 * 1024 * 1024
        for cand in (L, 4096, 2048, 1024, 512, 256, 128):
            if (cand <= L and L % cand == 0 and cand >= halo
                    and 4 * (3 * cmax * (cand + halo) + 2 * cin0 * cand) <= budget):
                tl = cand
                break
    assert L % tl == 0 and tl >= halo, (L, tl, halo)
    nlt = L // tl

    # Halo source: only the last 128-lane slab of the previous tile (not a full tile).
    if halo > 0 and halo <= 128 and tl % 128 == 0 and L % 128 == 0:
        slab = 128
        bpt = tl // 128
        xp_spec = pl.BlockSpec((None, cin0, slab),
                               lambda n, t: (n, 0, jnp.maximum(t * bpt - 1, 0)))
    else:
        slab = tl
        xp_spec = pl.BlockSpec((None, cin0, tl),
                               lambda n, t: (n, 0, jnp.maximum(t - 1, 0)))

    kernel = functools.partial(
        _tcn_kernel, nl=nl, k=k, dilation=dilation, tl=tl, halo=halo, slab=slab,
        cmax=cmax, cin0=cin0, cout_last=cout_last, ds_pos=ds_pos)

    n_ds = sum(1 for d in ds_pos if d >= 0)
    flops = N * nlt * (nl * k + n_ds) * 2 * cmax * cmax * (tl + halo)
    bytes_accessed = 4 * (N * cin0 * L + N * nlt * cin0 * slab + N * cout_last * L
                          + w_all.size + b_all.size + rd_all.size + rb_all.size)

    return pl.pallas_call(
        kernel,
        out_shape=jax.ShapeDtypeStruct((N, cout_last, L), x.dtype),
        grid=(N, nlt),
        in_specs=[
            pl.BlockSpec((None, cin0, tl), lambda n, t: (n, 0, t)),
            xp_spec,
            pl.BlockSpec(w_all.shape, lambda n, t: (0, 0, 0)),
            pl.BlockSpec(b_all.shape, lambda n, t: (0, 0, 0)),
            pl.BlockSpec(rd_all.shape, lambda n, t: (0, 0, 0)),
            pl.BlockSpec(rb_all.shape, lambda n, t: (0, 0, 0)),
        ],
        out_specs=pl.BlockSpec((None, cout_last, tl), lambda n, t: (n, 0, t)),
        compiler_params=pltpu.CompilerParams(
            dimension_semantics=("parallel", "parallel")),
        cost_estimate=pl.CostEstimate(flops=int(flops), transcendentals=0,
                                      bytes_accessed=int(bytes_accessed)),
    )(x, x, w_all, b_all, rd_all, rb_all)


# ------------------------- parameter construction -------------------------

def make_params(key, num_inputs, num_channels, kernel_size):
    """Deterministic synthetic params, weight_norm applied analytically (PyTorch layout)."""
    params = []
    for i, cout in enumerate(num_channels):
        cin = num_inputs if i == 0 else num_channels[i - 1]
        key, kv, kg, kb, kdw, kdb = jax.random.split(key, 6)
        # weight_norm(Conv1d): w = g * v / ||v||, norm over (Cin, k) per out-channel
        v = 0.01 * jax.random.normal(kv, (cout, cin, kernel_size), jnp.float32)
        g = 0.5 + jax.random.uniform(kg, (cout,), jnp.float32)
        norm = jnp.sqrt(jnp.sum(v * v, axis=(1, 2), keepdims=True)) + 1e-12
        w = g[:, None, None] * v / norm                 # (Cout, Cin, k)
        b = 0.1 * jax.random.normal(kb, (cout,), jnp.float32)
        if cin != cout:
            wd = 0.01 * jax.random.normal(kdw, (cout, cin), jnp.float32)
            bd = 0.1 * jax.random.normal(kdb, (cout,), jnp.float32)
        else:
            wd, bd = None, None
        params.append((w, b, wd, bd))
    return params


# ------------------------------ reference ---------------------------------

def ref_temporal_conv_net(x_ncl, params, *, kernel_size, dilation):
    h = x_ncl.astype(jnp.float32)                       # (N, C, L)
    p = (kernel_size - 1) * dilation
    for (w, b, wd, bd) in params:                       # w: (Cout, Cin, k)
        N, Cin, L = h.shape
        Cout = w.shape[0]
        hpad = jnp.pad(h, ((0, 0), (0, 0), (p, 0)))
        y = jnp.zeros((N, Cout, L), jnp.float32) + b[None, :, None]
        for j in range(kernel_size):
            y = y + jnp.einsum('ncl,oc->nol',
                               hpad[:, :, j * dilation:j * dilation + L], w[:, :, j])
        out1 = jnp.where(y > 0, y, NEG_SLOPE * y)
        res = h if wd is None else (jnp.einsum('ncl,oc->nol', h, wd) + bd[None, :, None])
        s = out1 + res
        h = jnp.where(s > 0, s, NEG_SLOPE * s)
    return h


if __name__ == "__main__":
    key = jax.random.PRNGKey(0)
    key, kx = jax.random.split(key)

    # TemporalConvNet(num_inputs=4, num_channels=[8, 8], kernel_size=2, dilation_size=1)
    num_inputs = 4
    num_channels = [8, 8]
    kernel_size = 2
    dilation = 1

    N, L = 2, 256
    x = jax.random.normal(kx, (N, num_inputs, L), jnp.float32)   # NCL like PyTorch

    params = make_params(key, num_inputs, num_channels, kernel_size)
    ref = ref_temporal_conv_net(x, params, kernel_size=kernel_size, dilation=dilation)

    # Multi-tile run (tl=128 -> grid (2, 2)): exercises the cross-tile causal-halo seam
    # and the sequence-start pad masking.
    out_tiled = temporal_conv_net(x, params, kernel_size=kernel_size,
                                  dilation=dilation, tl=128)
    out_tiled = jax.block_until_ready(out_tiled)
    assert out_tiled.shape == (N, num_channels[-1], L), out_tiled.shape
    assert jnp.allclose(out_tiled, ref, atol=1e-5, rtol=1e-5), "tiled mismatch vs reference"

    # Default run (auto tile picker -> single full-L tile per batch row).
    out = temporal_conv_net(x, params, kernel_size=kernel_size, dilation=dilation)
    out = jax.block_until_ready(out)
    assert out.shape == (N, num_channels[-1], L), out.shape
    assert jnp.allclose(out, ref, atol=1e-5, rtol=1e-5), "mismatch vs reference"

    print("KERNEL_OK")
</pallas_src>

<mosaic_0001>
module attributes {stable_mosaic.version = 11 : i64} {
  func.func @_tcn_kernel(%arg0: i32, %arg1: i32, %arg2: memref<1x4x128xf32, #tpu.memory_space<vmem>>, %arg3: memref<1x4x128xf32, #tpu.memory_space<vmem>>, %arg4: memref<4x8x8xf32, #tpu.memory_space<vmem>>, %arg5: memref<2x8x1xf32, #tpu.memory_space<vmem>>, %arg6: memref<1x8x8xf32, #tpu.memory_space<vmem>>, %arg7: memref<1x8x1xf32, #tpu.memory_space<vmem>>, %arg8: memref<1x8x128xf32, #tpu.memory_space<vmem>>) attributes {dimension_semantics = [#tpu.dimension_semantics<parallel>, #tpu.dimension_semantics<parallel>], iteration_bounds = array<i64: 2, 2>, scalar_prefetch = 0 : i64, scratch_operands = 0 : i64, tpu.core_type = #tpu.core_type<tc>, window_params = [{transform_indices = @transform_0, window_bounds = array<i64: 1, 4, 128>}, {transform_indices = @transform_1, window_bounds = array<i64: 1, 4, 128>}, {pipeline_mode = #tpu.pipeline_mode<synchronous>, transform_indices = @transform_2, window_bounds = array<i64: 4, 8, 8>}, {pipeline_mode = #tpu.pipeline_mode<synchronous>, transform_indices = @transform_3, window_bounds = array<i64: 2, 8, 1>}, {pipeline_mode = #tpu.pipeline_mode<synchronous>, transform_indices = @transform_4, window_bounds = array<i64: 1, 8, 8>}, {pipeline_mode = #tpu.pipeline_mode<synchronous>, transform_indices = @transform_5, window_bounds = array<i64: 1, 8, 1>}, {transform_indices = @transform_6, window_bounds = array<i64: 1, 8, 128>}]} {
    %c0 = arith.constant 0 : index
    %c0_0 = arith.constant 0 : index
    %c0_1 = arith.constant 0 : index
    %0 = vector.load %arg2[%c0, %c0_0, %c0_1] : memref<1x4x128xf32, #tpu.memory_space<vmem>>, vector<1x4x128xf32>
    %1 = vector.shape_cast %0 : vector<1x4x128xf32> to vector<4x128xf32>
    %c0_2 = arith.constant 0 : index
    %c0_3 = arith.constant 0 : index
    %c126 = arith.constant 126 : index
    %2 = vector.load %arg3[%c0_2, %c0_3, %c126] : memref<1x4x128xf32, #tpu.memory_space<vmem>>, vector<1x4x2xf32>
    %3 = vector.shape_cast %2 : vector<1x4x2xf32> to vector<4x2xf32>
    %4 = tpu.concatenate %3, %1 in 1 : vector<4x2xf32>, vector<4x128xf32> -> vector<4x130xf32>
    %cst = arith.constant 0.000000e+00 : f32
    %5 = vector.broadcast %cst : f32 to vector<4x130xf32>
    %6 = tpu.concatenate %4, %5 in 0 : vector<4x130xf32>, vector<4x130xf32> -> vector<8x130xf32>
    %7 = tpu.iota {dimensions = array<i32: 1>} : vector<8x130xi32>
    %c128_i32 = arith.constant 128 : i32
    %8 = arith.muli %arg1, %c128_i32 : i32
    %c2_i32 = arith.constant 2 : i32
    %9 = arith.subi %c2_i32, %8 : i32
    %c0_i32 = arith.constant 0 : i32
    %10 = arith.maxsi %9, %c0_i32 : i32
    %11 = vector.broadcast %10 : i32 to vector<8x130xi32>
    %12 = arith.cmpi sge, %7, %11 : vector<8x130xi32>
    %cst_4 = arith.constant 0.000000e+00 : f32
    %13 = vector.broadcast %cst_4 : f32 to vector<8x130xf32>
    %14 = arith.select %12, %6, %13 : vector<8x130xi1>, vector<8x130xf32>
    %c1 = arith.constant 1 : index
    %c0_5 = arith.constant 0 : index
    %c0_6 = arith.constant 0 : index
    %15 = vector.load %arg4[%c1, %c0_5, %c0_6] : memref<4x8x8xf32, #tpu.memory_space<vmem>>, vector<1x8x8xf32>
    %16 = vector.shape_cast %15 : vector<1x8x8xf32> to vector<8x8xf32>
    %cst_7 = arith.constant dense<0.000000e+00> : vector<8x130xf32>
    %17 = tpu.matmul %16, %14, %cst_7 {dimension_numbers = #tpu.dot_dimension_numbers<[1], [0], [0], [1], [0, 0, 1, 1], [], []>} : vector<8x8xf32>, vector<8x130xf32>, vector<8x130xf32> -> vector<8x130xf32>
    %cst_8 = arith.constant 0.000000e+00 : f32
    %18 = vector.broadcast %cst_8 : f32 to vector<8x1xf32>
    %19 = vector.extract_strided_slice %14 {offsets = [0, 0], sizes = [8, 129], strides = [1, 1]} : vector<8x130xf32> to vector<8x129xf32>
    %20 = tpu.concatenate %18, %19 in 1 : vector<8x1xf32>, vector<8x129xf32> -> vector<8x130xf32>
    %c0_9 = arith.constant 0 : index
    %c0_10 = arith.constant 0 : index
    %c0_11 = arith.constant 0 : index
    %21 = vector.load %arg4[%c0_9, %c0_10, %c0_11] : memref<4x8x8xf32, #tpu.memory_space<vmem>>, vector<1x8x8xf32>
    %22 = vector.shape_cast %21 : vector<1x8x8xf32> to vector<8x8xf32>
    %cst_12 = arith.constant dense<0.000000e+00> : vector<8x130xf32>
    %23 = tpu.matmul %22, %20, %cst_12 {dimension_numbers = #tpu.dot_dimension_numbers<[1], [0], [0], [1], [0, 0, 1, 1], [], []>} : vector<8x8xf32>, vector<8x130xf32>, vector<8x130xf32> -> vector<8x130xf32>
    %24 = arith.addf %17, %23 : vector<8x130xf32>
    %c0_13 = arith.constant 0 : index
    %c0_14 = arith.constant 0 : index
    %c0_15 = arith.constant 0 : index
    %25 = vector.load %arg5[%c0_13, %c0_14, %c0_15] : memref<2x8x1xf32, #tpu.memory_space<vmem>>, vector<1x8x1xf32>
    %26 = vector.shape_cast %25 : vector<1x8x1xf32> to vector<8x1xf32>
    %27 = vector.broadcast %26 : vector<8x1xf32> to vector<8x130xf32>
    %28 = arith.addf %24, %27 : vector<8x130xf32>
    %cst_16 = arith.constant 0.000000e+00 : f32
    %29 = vector.broadcast %cst_16 : f32 to vector<8x130xf32>
    %30 = arith.cmpf ogt, %28, %29 : vector<8x130xf32>
    %cst_17 = arith.constant 0.00999999977 : f32
    %31 = vector.broadcast %cst_17 : f32 to vector<8x130xf32>
    %32 = arith.mulf %31, %28 : vector<8x130xf32>
    %33 = arith.select %30, %28, %32 : vector<8x130xi1>, vector<8x130xf32>
    %c0_18 = arith.constant 0 : index
    %c0_19 = arith.constant 0 : index
    %c0_20 = arith.constant 0 : index
    %34 = vector.load %arg6[%c0_18, %c0_19, %c0_20] : memref<1x8x8xf32, #tpu.memory_space<vmem>>, vector<1x8x8xf32>
    %35 = vector.shape_cast %34 : vector<1x8x8xf32> to vector<8x8xf32>
    %cst_21 = arith.constant dense<0.000000e+00> : vector<8x130xf32>
    %36 = tpu.matmul %35, %14, %cst_21 {dimension_numbers = #tpu.dot_dimension_numbers<[1], [0], [0], [1], [0, 0, 1, 1], [], []>} : vector<8x8xf32>, vector<8x130xf32>, vector<8x130xf32> -> vector<8x130xf32>
    %c0_22 = arith.constant 0 : index
    %c0_23 = arith.constant 0 : index
    %c0_24 = arith.constant 0 : index
    %37 = vector.load %arg7[%c0_22, %c0_23, %c0_24] : memref<1x8x1xf32, #tpu.memory_space<vmem>>, vector<1x8x1xf32>
    %38 = vector.shape_cast %37 : vector<1x8x1xf32> to vector<8x1xf32>
    %39 = vector.broadcast %38 : vector<8x1xf32> to vector<8x130xf32>
    %40 = arith.addf %36, %39 : vector<8x130xf32>
    %41 = arith.addf %33, %40 : vector<8x130xf32>
    %cst_25 = arith.constant 0.000000e+00 : f32
    %42 = vector.broadcast %cst_25 : f32 to vector<8x130xf32>
    %43 = arith.cmpf ogt, %41, %42 : vector<8x130xf32>
    %cst_26 = arith.constant 0.00999999977 : f32
    %44 = vector.broadcast %cst_26 : f32 to vector<8x130xf32>
    %45 = arith.mulf %44, %41 : vector<8x130xf32>
    %46 = arith.select %43, %41, %45 : vector<8x130xi1>, vector<8x130xf32>
    %cst_27 = arith.constant 0.000000e+00 : f32
    %47 = vector.broadcast %cst_27 : f32 to vector<8x130xf32>
    %48 = arith.select %12, %46, %47 : vector<8x130xi1>, vector<8x130xf32>
    %c3 = arith.constant 3 : index
    %c0_28 = arith.constant 0 : index
    %c0_29 = arith.constant 0 : index
    %49 = vector.load %arg4[%c3, %c0_28, %c0_29] : memref<4x8x8xf32, #tpu.memory_space<vmem>>, vector<1x8x8xf32>
    %50 = vector.shape_cast %49 : vector<1x8x8xf32> to vector<8x8xf32>
    %cst_30 = arith.constant dense<0.000000e+00> : vector<8x130xf32>
    %51 = tpu.matmul %50, %48, %cst_30 {dimension_numbers = #tpu.dot_dimension_numbers<[1], [0], [0], [1], [0, 0, 1, 1], [], []>} : vector<8x8xf32>, vector<8x130xf32>, vector<8x130xf32> -> vector<8x130xf32>
    %cst_31 = arith.constant 0.000000e+00 : f32
    %52 = vector.broadcast %cst_31 : f32 to vector<8x1xf32>
    %53 = vector.extract_strided_slice %48 {offsets = [0, 0], sizes = [8, 129], strides = [1, 1]} : vector<8x130xf32> to vector<8x129xf32>
    %54 = tpu.concatenate %52, %53 in 1 : vector<8x1xf32>, vector<8x129xf32> -> vector<8x130xf32>
    %c2 = arith.constant 2 : index
    %c0_32 = arith.constant 0 : index
    %c0_33 = arith.constant 0 : index
    %55 = vector.load %arg4[%c2, %c0_32, %c0_33] : memref<4x8x8xf32, #tpu.memory_space<vmem>>, vector<1x8x8xf32>
    %56 = vector.shape_cast %55 : vector<1x8x8xf32> to vector<8x8xf32>
    %cst_34 = arith.constant dense<0.000000e+00> : vector<8x130xf32>
    %57 = tpu.matmul %56, %54, %cst_34 {dimension_numbers = #tpu.dot_dimension_numbers<[1], [0], [0], [1], [0, 0, 1, 1], [], []>} : vector<8x8xf32>, vector<8x130xf32>, vector<8x130xf32> -> vector<8x130xf32>
    %58 = arith.addf %51, %57 : vector<8x130xf32>
    %c1_35 = arith.constant 1 : index
    %c0_36 = arith.constant 0 : index
    %c0_37 = arith.constant 0 : index
    %59 = vector.load %arg5[%c1_35, %c0_36, %c0_37] : memref<2x8x1xf32, #tpu.memory_space<vmem>>, vector<1x8x1xf32>
    %60 = vector.shape_cast %59 : vector<1x8x1xf32> to vector<8x1xf32>
    %61 = vector.broadcast %60 : vector<8x1xf32> to vector<8x130xf32>
    %62 = arith.addf %58, %61 : vector<8x130xf32>
    %cst_38 = arith.constant 0.000000e+00 : f32
    %63 = vector.broadcast %cst_38 : f32 to vector<8x130xf32>
    %64 = arith.cmpf ogt, %62, %63 : vector<8x130xf32>
    %cst_39 = arith.constant 0.00999999977 : f32
    %65 = vector.broadcast %cst_39 : f32 to vector<8x130xf32>
    %66 = arith.mulf %65, %62 : vector<8x130xf32>
    %67 = arith.select %64, %62, %66 : vector<8x130xi1>, vector<8x130xf32>
    %68 = arith.addf %67, %48 : vector<8x130xf32>
    %cst_40 = arith.constant 0.000000e+00 : f32
    %69 = vector.broadcast %cst_40 : f32 to vector<8x130xf32>
    %70 = arith.cmpf ogt, %68, %69 : vector<8x130xf32>
    %cst_41 = arith.constant 0.00999999977 : f32
    %71 = vector.broadcast %cst_41 : f32 to vector<8x130xf32>
    %72 = arith.mulf %71, %68 : vector<8x130xf32>
    %73 = arith.select %70, %68, %72 : vector<8x130xi1>, vector<8x130xf32>
    %74 = vector.extract_strided_slice %73 {offsets = [0, 2], sizes = [8, 128], strides = [1, 1]} : vector<8x130xf32> to vector<8x128xf32>
    %c0_42 = arith.constant 0 : index
    %c0_43 = arith.constant 0 : index
    %c0_44 = arith.constant 0 : index
    %75 = vector.load %arg8[%c0_42, %c0_43, %c0_44] : memref<1x8x128xf32, #tpu.memory_space<vmem>>, vector<1x8x128xf32>
    %76 = vector.shape_cast %75 : vector<1x8x128xf32> to vector<8x128xf32>
    %77 = vector.shape_cast %74 : vector<8x128xf32> to vector<1x8x128xf32>
    tpu.vector_store %arg8[%c0_42, %c0_43, %c0_44], %77 {strides = array<i32>} : memref<1x8x128xf32, #tpu.memory_space<vmem>>, vector<1x8x128xf32>,
    return
  }
  func.func @transform_0(%arg0: i32, %arg1: i32) -> (i32, i32, i32) {
    %c0_i32 = arith.constant 0 : i32
    %c0_i32_0 = arith.constant 0 : i32
    return %arg0, %c0_i32, %arg1 : i32, i32, i32
  }
  func.func @transform_1(%arg0: i32, %arg1: i32) -> (i32, i32, i32) {
    %c1_i32 = arith.constant 1 : i32
    %0 = arith.muli %arg1, %c1_i32 : i32
    %c1_i32_0 = arith.constant 1 : i32
    %1 = arith.subi %0, %c1_i32_0 : i32
    %c0_i32 = arith.constant 0 : i32
    %2 = arith.maxsi %1, %c0_i32 : i32
    %c0_i32_1 = arith.constant 0 : i32
    %c0_i32_2 = arith.constant 0 : i32
    return %arg0, %c0_i32_1, %2 : i32, i32, i32
  }
  func.func @transform_2(%arg0: i32, %arg1: i32) -> (i32, i32, i32) {
    %c0_i32 = arith.constant 0 : i32
    %c0_i32_0 = arith.constant 0 : i32
    %c0_i32_1 = arith.constant 0 : i32
    %c0_i32_2 = arith.constant 0 : i32
    return %c0_i32, %c0_i32_0, %c0_i32_1 : i32, i32, i32
  }
  func.func @transform_3(%arg0: i32, %arg1: i32) -> (i32, i32, i32) {
    %c0_i32 = arith.constant 0 : i32
    %c0_i32_0 = arith.constant 0 : i32
    %c0_i32_1 = arith.constant 0 : i32
    %c0_i32_2 = arith.constant 0 : i32
    return %c0_i32, %c0_i32_0, %c0_i32_1 : i32, i32, i32
  }
  func.func @transform_4(%arg0: i32, %arg1: i32) -> (i32, i32, i32) {
    %c0_i32 = arith.constant 0 : i32
    %c0_i32_0 = arith.constant 0 : i32
    %c0_i32_1 = arith.constant 0 : i32
    %c0_i32_2 = arith.constant 0 : i32
    return %c0_i32, %c0_i32_0, %c0_i32_1 : i32, i32, i32
  }
  func.func @transform_5(%arg0: i32, %arg1: i32) -> (i32, i32, i32) {
    %c0_i32 = arith.constant 0 : i32
    %c0_i32_0 = arith.constant 0 : i32
    %c0_i32_1 = arith.constant 0 : i32
    %c0_i32_2 = arith.constant 0 : i32
    return %c0_i32, %c0_i32_0, %c0_i32_1 : i32, i32, i32
  }
  func.func @transform_6(%arg0: i32, %arg1: i32) -> (i32, i32, i32) {
    %c0_i32 = arith.constant 0 : i32
    %c0_i32_0 = arith.constant 0 : i32
    return %arg0, %c0_i32, %arg1 : i32, i32, i32
  }
}

</mosaic_0001>

<bundles_post_ra>
// kernel: tpu_custom_call.1
= control target key start
LH: loop header
LB: loop body
LE: loop exit
PB: predicated region body
PF: predicated region fallthrough
CT: control target
= control target key end

     0   :  { %s1491_s0 = inlined_call_operand.vmem [shape: f32[2,4,256], index: 0, kind: input, shape index: {}]   ;;  %s1492_s1 = inlined_call_operand.hbm [shape: f32[2,4,256], index: 1, kind: input, shape index: {}]   ;;  %s1493_s2 = inlined_call_operand.hbm [shape: f32[4,8,8], index: 2, kind: input, shape index: {}]   ;;  %s1494_s3 = inlined_call_operand.vmem [shape: f32[2,8,1], index: 3, kind: input, shape index: {}]   ;;  %s1495_s4 = inlined_call_operand.vmem [shape: f32[1,8,8], index: 4, kind: input, shape index: {}]   ;;  %s1496_s5 = inlined_call_operand.vmem [shape: f32[1,8,1], index: 5, kind: input, shape index: {}]   ;;  %s1497_s6 = inlined_call_operand.hbm [shape: f32[2,8,256], index: 6, kind: output, shape index: {}]  }
   0x1   :  { %1504 = sst [smem:[#allocation18_spill]] %s1493_s2 }
   0x2   :  { %1505 = sst [smem:[#allocation19_spill]] %s1497_s6 }
   0x3   :  { %11 = vsyncpa [#allocation3], 0 }
   0x4   :  { %13 = vsyncpa [#allocation3 + $0x1], 0 }
   0x5   :  { %14 = vsyncpa [#allocation6], 0 }
   0x6   :  { %15 = vsyncpa [#allocation4], 0 }
   0x7   :  { %17 = vsyncpa [#allocation4 + $0x1], 0  ;;  %s1209_s21 = smov 0   ;;  %s1211_s22 = smov 0  }
   0x8   :  { %s1213_s23 = smov 0   ;;  %s1215_s24 = smov 0  }
   0x9   :  { %s1217_s25 = smov 0   ;;  %s1219_s26 = smov 0  }
   0xa   :  { %s1221_s27 = smov 0   ;;  %s1223_s28 = smov 0  }
   0xb   :  { %s1225_s29 = smov 0   ;;  %s1227_s30 = smov 0  }
   0xc   :  { %s1229_s7 = smov 0  }
   0xd LB: > { %1506 = sst [smem:[#allocation11_spill]] %s1133_s23  ;;  %s813_s8 = sadd.s32 4294967295, %s1165_s7   ;;  %s1165_s7 = sphi %s1229_s7, %s23_s7   ;;  %s1161_s30 = sphi %s1227_s30, %s1541_s30   ;;  %s1157_s29 = sphi %s1225_s29, %s1534_s29   ;;  %s1153_s28 = sphi %s1223_s28, %s1540_s28   ;;  %s1149_s27 = sphi %s1221_s27, %s1533_s27   ;;  %s1145_s26 = sphi %s1219_s26, %s1532_s26   ;;  %s1141_s25 = sphi %s1217_s25, %s1539_s25   ;;  %s1137_s24 = sphi %s1215_s24, %s1538_s24   ;;  %s1133_s23 = sphi %s1213_s23, %s1530_s23   ;;  %s1129_s22 = sphi %s1211_s22, %s1537_s22   ;;  %s1125_s21 = sphi %s1209_s21, %s1536_s21  }
   0xe   : > { %1507 = sst [smem:[#allocation12_spill]] %s1145_s26  ;;  %p817_p0 = scmp.ge.s32.totalorder %s1165_s7, 1 }
   0xf   : > { %1508 = sst [smem:[#allocation13_spill]] %s1157_s29  ;;  %p1266_p1 = scmp.eq.s32.totalorder %s813_s8, 0 }
  0x10   : > { %p1270_p2 = scmp.eq.s32.totalorder %s813_s8, 3  ;;  %p214_p3 = scmp.lt.s32.totalorder %s1165_s7, 5 }
  0x11   : > { %s1511_s2 = sld [smem:[#allocation18_spill]]  ;;  %s1167_s15 = smov [#allocation5]  }
  0x12   : > { %p1278_p4 = pnand %p817_p0, %p214_p3  ;;  %s227_s16 = sshll.u32 %s1167_s15, 4  ;;  %s228_s16 = int_to_ptr.vmem [resolvable:$true] %s227_s16 }
  0x13   : > { %s1168_s17 = smov 128   ;;  %s1169_s18 = smov 8  }
  0x14   : > { %p865_p5 = pneg %p1278_p4  ;;  %s814_s19 = sadd.s32 4294967294, %s1165_s7  }
  0x15   : > { %s32_s20 = sadd.s32 1, %s1157_s29  ;;  %s35_s8 = sadd.s32 1, %s1161_s30 }
  0x16   : > { %p866_p6 = pnand %p865_p5, %p1266_p1  ;;  %p33_p7 = scmp.ge.s32.totalorder %s32_s20, 2 }
  0x17   : > { %s225_s13 = sshll.u32 %s1511_s2, 4  ;;  %s78_s11 = sadd.s32 1, %s1145_s26  ;;  %s226_s13 = int_to_ptr.hbm [resolvable:$true] %s225_s13 }
  0x18   : > { %868 = dma.hbm_to_vmem [thread:$0]  (!%p866_p6), %s226_s13, 512, %s228_s16, [#allocation6], %s1168_s17, %s1168_s17, %s1169_s18  }
  0x19   : > { %s1543_s20 = smov (%p33_p7, %s32_s20), 0  ;;  %s1545_s8 = smov (!%p33_p7, %s35_s8), %s1161_s30 }
  0x1a   : > { %1513 = sst [smem:[#allocation14_spill]] %s1543_s20  ;;  %p37_p8 = scmp.ge.s32.totalorder %s1545_s8, 2 }
  0x1b   : > { %p85_p9 = scmp.ne.s32.totalorder %s1145_s26, %s1141_s25  ;;  %p86_p10 = scmp.eq.s32.totalorder %s1165_s7, 0 }
  0x1c   : > { %s1547_s8 = smov (%p37_p8, %s1545_s8), 0  ;;  %p91_p11 = scmp.ne.s32.totalorder %s1141_s25, %s1137_s24 }
  0x1d   : > { %1514 = sst [smem:[#allocation15_spill]] %s1547_s8  ;;  %s73_s12 = ssub.s32 %s1161_s30, %s1547_s8 }
  0x1e   : > { %p76_p12 = scmp.eq.s32.totalorder %s73_s12, 0  ;;  %p1302_p13 = por %p86_p10, %p85_p9 }
  0x1f   : > { %p1308_p0 = por %p1266_p1, %p91_p11  ;;  %s186_s16 = ssub.s32 %s1157_s29, %s1543_s20 }
  0x20   : > { %s1315_s17 = scalar_select %p76_p12, %s1145_s26, %s78_s11  }
  0x21   : > { %s187_s18 = sor.u32 %s186_s16, %s73_s12  ;;  %s190_s2 = sadd.s32 1, %s1133_s23 }
  0x22   : > { %1517 = sst [smem:[#allocation16_spill]] %s1315_s17  ;;  %p188_p3 = scmp.eq.s32.totalorder %s187_s18, 0 }
  0x23   : > { %p200_p5 = scmp.ne.s32.totalorder %s1133_s23, %s1129_s22  ;;  %p206_p6 = scmp.ne.s32.totalorder %s1129_s22, %s1125_s21 }
  0x24   : > { %p207_p7 = scmp.eq.s32.totalorder %s814_s19, 3  ;;  %p878_p10 = scmp.lt.s32.totalorder %s1165_s7, 4 }
  0x25   : > { %s1323_s24 = scalar_select %p188_p3, %s1133_s23, %s190_s2  }
  0x26   : > { %p1327_p8 = por %p1270_p2, %p200_p5  ;;  %p1331_p9 = por %p207_p7, %p206_p6 }
  0x27   : > { %1518 = sst [smem:[#allocation17_spill]] %s1323_s24  ;;  %s261_s11 = sand.u32 1, %s1145_s26  }
  0x28   : > { %s820_s12 = sshll.u32 %s261_s11, 2  ;;  %s1122_s18 = sshll.u32 %s1161_s30, 3 }
  0x29   : > { %s265_s16 = scalar_lea.vmem [#allocation2], %s820_s12  ;;  %s274_s2 = scalar_lea.hbm %s1492_s1, %s1122_s18 }
  0x2a   : > { %s278_s20 = sshll.u32 %s265_s16, 4  ;;  %p1343_p2 = pnand %p878_p10, %p1302_p13  ;;  %s279_s20 = int_to_ptr.vmem [resolvable:$true] %s278_s20 }
  0x2b   : > { %s276_s17 = sshll.u32 %s274_s2, 4  ;;  %s262_s24 = scalar_lea.sflag [#allocation3], %s261_s11  ;;  %s277_s17 = int_to_ptr.hbm [resolvable:$true] %s276_s17 }
  0x2c   : > { %s1008_s23 = sshra.s32 %s277_s17, 4  ;;  %p1012_p12 = pneg %p1343_p2  ;;  %s1009_s23 = int_to_ptr.hbm [resolvable:$true] %s1008_s23 }
  0x2d   : > { %s1010_s26 = scalar_lea.hbm %s1009_s23, 4  ;;  %p1016_p6 = scmp.lt.s32.totalorder %s1009_s23, %s1492_s1 }
  0x2e   : > { %p1011_p11 = scmp.ne.s32.totalorder %s1009_s23, %s1010_s26 }
  0x30   : > { %p1013_p3 = pnand %p1012_p12, %p1011_p11 }
  0x32   : > { %p1014_p5 = pneg %p1013_p3 }
  0x34   : > { %p1019_p13 = pnand %p1016_p6, %p1014_p5 }
  0x36   : > { %1022 = shalt.err (!%p1019_p13)
}
  0x37   : > { %872 = dma.hbm_to_vmem [thread:$0]  (!%p1343_p2), %s277_s17, 64, %s279_s20, %s262_s24  }
  0x38   : > { %287 = sbr.rel (%p1278_p4) target bundleno = 839 (0x347), region = 44  ;;  %s289_s13 = sand.u32 (!%p1278_p4), 1, %s1141_s25  }
  0x39   : > { %s825_s26 = sshll.u32 (!%p1278_p4), %s289_s13, 2  ;;  %s290_s11 = scalar_lea.sflag (!%p1278_p4), [#allocation3], %s289_s13 }
  0x3a   : > { %s293_s16 = scalar_lea.vmem (!%p1278_p4), [#allocation2], %s825_s26 }
  0x3d   : > { %1111 = dma.done.wait (%p1308_p0), %s290_s11, 64  }
  0x3e   : > { %1113 = vsyncadd (%p1308_p0), %s290_s11, 4294967232 }
  0x3f   : > { %1115 = dma.done.wait (%p1266_p1), [#allocation6], 512  }
  0x40   : > { %1117 = vsyncadd (%p1266_p1), [#allocation6], 4294966784  ;;  %p336_p4 = scmp.lt.s32.totalorder %s1153_s28, 1  ;;  %p338_p7 = scmp.lt.s32.totalorder %s1149_s27, 1  ;;  %v348_v0 = vld [vmem:[%s293_s16] sm:$0xf]  ;;  %v362_v2 = vlaneseq }
  0x41   : > { %s1170_s24 = smov 2   ;;  %s830_s2 = sshll.u32 %s1149_s27, 7  ;;  %vm357_vm0 = vcmask 15360   ;;  %vm359_vm1 = vcmask 1043456   ;;  %v375_v12 = vld [vmem:[#allocation5 + $0x8] sm:$0xff]  ;;  %vm388_vm4 = vcmask 64512  }
  0x42   : > { %s337_s23 = scalar_select %p336_p4, %s1153_s28, 1  ;;  %350 = vrot.lane.b32.xlu0 %v348_v0, %s1170_s24  ;;  %v363_v3 = vand.u32 127, %v362_v2  ;;  %v475_v16 = vld [vmem:[%s1494_s3] sm:$0xff]  ;;  %v1172_v17 = vmov 0   ;;  %vm382_vm5 = vcmask 7168   ;;  %v387_v20 = vld [vmem:[#allocation5] sm:$0xff] }
  0x43   : > { %s339_s14 = scalar_select %p338_p7, %s1149_s27, 1  ;;  %976 = vset.pattern.permute.xlu2 %v1172_v17  ;;  %977 = vset.pattern.permute.xlu0 %v1172_v17  ;;  %v490_v18 = vld [vmem:[%s1496_s5] sm:$0xff]  ;;  %vm1400_vm6 = vmneg %vm382_vm5  ;;  %v851_v22 = vld [vmem:[%s1494_s3 + $0x8] sm:$0xff]  ;;  %vm678_vm15 = vcmask 1031168  }
  0x44   : > { %s828_s20 = sshll.u32 %s337_s23, 1  ;;  %s366_s10 = ssub.s32 2, %s830_s2  ;;  %v364_v5 = vadd.s32 128, %v363_v3  ;;  %478 = vperm.xlu2 %976, %v475_v16   ;;  %v489_v23 = vld [vmem:[%s1495_s4] sm:$0xff]  ;;  %v562_v53 = vld [vmem:[#allocation5 + $0x10] sm:$0xff] }
  0x45   : > { %s341_s17 = sadd.s32 %s828_s20, %s339_s14  ;;  %p367_p1 = scmp.gt.s32.totalorder %s366_s10, 0  ;;  %v550_v52 = vld [vmem:[#allocation5 + $0x18] sm:$0xff] }
  0x46   : > { %s829_s15 = sshll.u32 %s341_s17, 2  ;;  %s1171_s12 = smov 1  }
  0x47   : > { %s343_s9 = scalar_lea.vmem %s1491_s0, %s829_s15  ;;  %s1549_s10 = smov (!%p367_p1, %s366_s10), 0 }
  0x48   : > { %v347_v1 = vld [vmem:[%s343_s9] sm:$0xf]  ;;  %v369_v6 = vstv %s1549_s10  ;;  %s1173_s17 = smov 126   ;;  %s853_s15 = sshll.u32 %s1153_s28, 1 }
  0x49   : > { %vm1373_vm2 = vcmp.ge.s32.totalorder %v364_v5, %v369_v6  ;;  %vm1377_vm3 = vcmp.ge.s32.totalorder %v363_v3, %v369_v6  ;;  %s693_s18 = sadd.s32 %s1149_s27, %s853_s15 }
  0x4a   : > { %354 = vrot.lane.b32.xlu0 %v347_v1, %s1170_s24  ;;  %s333_s24 = sand.u32 1, %s1129_s22   ;;  %s854_s9 = sshll.u32 %s693_s18, 3 }
  0x4b   : > { %s827_s19 = sshll.u32 %s333_s24, 3  ;;  %s683_s28 = scalar_lea.sflag [#allocation4], %s333_s24 }
  0x4c   : > { %493 = vperm.xlu2 %976, %v490_v18   ;;  %s335_s13 = scalar_lea.vmem [#allocation7], %s827_s19 }
  0x4d   : > { %s697_s26 = sshll.u32 %s335_s13, 4  ;;  %s698_s26 = int_to_ptr.vmem [resolvable:$true] %s697_s26 }
  0x54   : > { %653 = vperm.xlu2 %976, %v851_v22  }
  0x9e   : > { %v479_v26 = vpop.permute.xlu2 %478 }
  0xa6   : > { %v494_v33 = vpop.permute.xlu2 %493 }
  0xae   : > { %v654_v60 = vpop.permute.xlu2 %653 }
  0xb4   : > { %v351_v4 = vpop.permute.xlu0 %350 }
  0xbc   : > { %v355_v8 = vpop.permute.xlu0 %354 }
  0xbd   : > { %v358_v10 = vsel %vm357_vm0, %v351_v4, %v355_v8  ;;  %v361_v11 = vsel %vm359_vm1, %v355_v8, 0.0 }
  0xbe   : > { %837 = vmatpush.msk.msra.mxu3 %vm1373_vm2, %v361_v11  ;;  %v360_v13 = vsel %vm359_vm1, %v358_v10, 0.0  ;;  %v373_v15 = vsel %vm1373_vm2, %v361_v11, 0.0 }
  0xbf   : > { %835 = vmatpush.msk.msra.mxu2 %vm1377_vm3, %v360_v13  ;;  %v372_v14 = vsel %vm1377_vm3, %v360_v13, 0.0  ;;  %838 = vmatmul.msk.f32.vlgmr.msra.gmra.mxu3 %vm388_vm4, %v375_v12 }
  0xc0   : > { %378 = vrot.lane.b32.xlu1 %v372_v14, %s1171_s12  ;;  %836 = vmatmul.msk.f32.vlgmr.msra.gmra.mxu2 %vm388_vm4, %v375_v12 }
  0xc8   : > { %380 = vrot.lane.b32.xlu1 %v373_v15, %s1171_s12 }
 0x132   : > { %v379_v21 = vpop.permute.xlu1 %378 }
 0x133   : > { %832 = vmatpush.msk.msra.mxu0 %vm1400_vm6, %v379_v21 }
 0x134   : > { %833 = vmatmul.msk.f32.vlgmr.msra.gmra.mxu0 %vm388_vm4, %v387_v20 }
 0x135   : > { %839 = vmatpush.msk.msrb.mxu0 %vm1377_vm3, %v360_v13 }
 0x13a   : > { %v381_v24 = vpop.permute.xlu1 %380 }
 0x13b   : > { %v383_v25 = vsel %vm382_vm5, %v379_v21, %v381_v24 }
 0x13c   : > { %427 = vmatpush.msra.mxu1 %v383_v25  ;;  %840 = vmatmul.msk.f32.vlgmr.msrb.gmra.mxu0 %vm388_vm4, %v489_v23 }
 0x13d   : > { %834 = vmatmul.msk.f32.vlgmr.msra.gmra.mxu1 %vm388_vm4, %v387_v20 }
 0x13e   : > { %841 = vmatpush.msk.msrb.mxu1 %vm1373_vm2, %v361_v11 }
 0x142   : > { %v472_v32 = vpop.f32.mrf.mxu3 }
 0x143   : > { %v452_v27 = vpop.f32.mrf.mxu2 }
 0x145   : > { %842 = vmatmul.msk.f32.vlgmr.msrb.gmra.mxu1 %vm388_vm4, %v489_v23 }
 0x1b1   : > { %v409_v28 = vpop.f32.mrf.mxu0 }
 0x1b2   : > { %v453_v29 = vadd.f32 %v452_v27, %v409_v28 }
 0x1b4   : > { %v481_v30 = vadd.f32 %v479_v26, %v453_v29 }
 0x1b6   : > { %v485_v31 = vmul.f32 0.01, %v481_v30  ;;  %vm483_vm7 = vcmp.gt.f32.partialorder %v481_v30, 0.0 }
 0x1b8   : > { %v487_v34 = vsel %vm483_vm7, %v481_v30, %v485_v31 }
 0x1b9   : > { %v516_v35 = vpop.f32.mrf.mxu0 }
 0x1ba   : > { %v517_v36 = vadd.f32 %v516_v35, %v494_v33  ;;  %v429_v37 = vpop.f32.mrf.mxu1 }
 0x1bb   : > { %v473_v38 = vadd.f32 %v472_v32, %v429_v37 }
 0x1bc   : > { %v539_v39 = vadd.f32 %v517_v36, %v487_v34 }
 0x1bd   : > { %v482_v40 = vadd.f32 %v479_v26, %v473_v38 }
 0x1be   : > { %vm541_vm8 = vcmp.gt.f32.partialorder %v539_v39, 0.0  ;;  %v543_v41 = vmul.f32 0.01, %v539_v39 }
 0x1bf   : > { %v486_v42 = vmul.f32 0.01, %v482_v40  ;;  %vm484_vm9 = vcmp.gt.f32.partialorder %v482_v40, 0.0 }
 0x1c0   : > { %v545_v43 = vsel %vm541_vm8, %v539_v39, %v543_v41 }
 0x1c1   : > { %847 = vmatpush.msk.msra.mxu0 %vm1377_vm3, %v545_v43  ;;  %v547_v44 = vsel %vm1377_vm3, %v545_v43, 0.0  ;;  %v488_v47 = vsel %vm484_vm9, %v482_v40, %v486_v42 }
 0x1c2   : > { %553 = vrot.lane.b32.xlu0 %v547_v44, %s1171_s12  ;;  %v536_v45 = vpop.f32.mrf.mxu1  ;;  %848 = vmatmul.msk.f32.vlgmr.msra.gmra.mxu0 %vm388_vm4, %v550_v52 }
 0x1c3   : > { %v537_v46 = vadd.f32 %v536_v45, %v494_v33 }
 0x1c5   : > { %v540_v48 = vadd.f32 %v537_v46, %v488_v47 }
 0x1c7   : > { %vm542_vm10 = vcmp.gt.f32.partialorder %v540_v48, 0.0  ;;  %v544_v49 = vmul.f32 0.01, %v540_v48 }
 0x1c9   : > { %v546_v50 = vsel %vm542_vm10, %v540_v48, %v544_v49 }
 0x1ca   : > { %849 = vmatpush.msk.msra.mxu1 %vm1373_vm2, %v546_v50  ;;  %v548_v51 = vsel %vm1373_vm2, %v546_v50, 0.0 }
 0x1cb   : > { %555 = vrot.lane.b32.xlu1 %v548_v51, %s1171_s12  ;;  %850 = vmatmul.msk.f32.vlgmr.msra.gmra.mxu1 %vm388_vm4, %v550_v52  ;;  %s1528_s12 = sld [smem:[#allocation19_spill]] }
 0x1d1   : > { %s695_s29 = scalar_lea.hbm %s1528_s12, %s854_s9  ;;  %s1058_s20 = scalar_lea.hbm %s1528_s12, 32 }
 0x1d2   : > { %s699_s11 = sshll.u32 %s695_s29, 4  ;;  %s700_s11 = int_to_ptr.hbm [resolvable:$true] %s699_s11 }
 0x1d3   : > { %s1052_s16 = sshra.s32 %s700_s11, 4  ;;  %s1053_s16 = int_to_ptr.hbm [resolvable:$true] %s1052_s16 }
 0x1d4   : > { %s1054_s27 = scalar_lea.hbm %s1053_s16, 8  ;;  %p1059_p11 = scmp.lt.s32.totalorder %s1053_s16, %s1528_s12 }
 0x1d5   : > { %p1055_p0 = scmp.ne.s32.totalorder %s1053_s16, %s1054_s27  ;;  %p1060_p12 = scmp.lt.s32.totalorder %s1058_s20, %s1054_s27 }
 0x1d7   : > { %p1056_p10 = pnand %p1055_p0, %p1327_p8  ;;  %p1061_p3 = por %p1060_p12, %p1059_p11 }
 0x1d9   : > { %p1057_p2 = pneg %p1056_p10 }
 0x1db   : > { %p1062_p5 = pnand %p1061_p3, %p1057_p2 }
 0x234   : > { %v554_v54 = vpop.permute.xlu0 %553 }
 0x235   : > { %844 = vmatpush.msk.msrb.mxu2 %vm1400_vm6, %v554_v54 }
 0x236   : > { %845 = vmatmul.msk.f32.vlgmr.msrb.gmra.mxu2 %vm388_vm4, %v562_v53 }
 0x23d   : > { %v556_v55 = vpop.permute.xlu1 %555 }
 0x23e   : > { %v557_v56 = vsel %vm382_vm5, %v554_v54, %v556_v55 }
 0x23f   : > { %601 = vmatpush.msrb.mxu3 %v557_v56  ;;  %v626_v57 = vpop.f32.mrf.mxu0 }
 0x240   : > { %846 = vmatmul.msk.f32.vlgmr.msrb.gmra.mxu3 %vm388_vm4, %v562_v53 }
 0x248   : > { %v646_v0 = vpop.f32.mrf.mxu1 }
 0x2b9   : > { %v583_v58 = vpop.f32.mrf.mxu2 }
 0x2ba   : > { %v627_v59 = vadd.f32 %v626_v57, %v583_v58 }
 0x2bc   : > { %v656_v61 = vadd.f32 %v654_v60, %v627_v59 }
 0x2be   : > { %vm658_vm11 = vcmp.gt.f32.partialorder %v656_v61, 0.0  ;;  %v660_v62 = vmul.f32 0.01, %v656_v61 }
 0x2c0   : > { %v662_v63 = vsel %vm658_vm11, %v656_v61, %v660_v62 }
 0x2c1   : > { %v664_v1 = vadd.f32 %v662_v63, %v547_v44 }
 0x2c3   : > { %v603_v2 = vpop.f32.mrf.mxu3  ;;  %vm666_vm12 = vcmp.gt.f32.partialorder %v664_v1, 0.0  ;;  %v668_v3 = vmul.f32 0.01, %v664_v1 }
 0x2c4   : > { %v647_v4 = vadd.f32 %v646_v0, %v603_v2 }
 0x2c5   : > { %v670_v5 = vsel %vm666_vm12, %v664_v1, %v668_v3 }
 0x2c6   : > { %v657_v6 = vadd.f32 %v654_v60, %v647_v4  ;;  %674 = vrot.lane.b32.xlu0 %v670_v5, %s1173_s17 }
 0x2c8   : > { %vm659_vm13 = vcmp.gt.f32.partialorder %v657_v6, 0.0  ;;  %v661_v7 = vmul.f32 0.01, %v657_v6 }
 0x2ca   : > { %v663_v8 = vsel %vm659_vm13, %v657_v6, %v661_v7 }
 0x2cb   : > { %v665_v9 = vadd.f32 %v663_v8, %v548_v51 }
 0x2cd   : > { %vm667_vm14 = vcmp.gt.f32.partialorder %v665_v9, 0.0  ;;  %v669_v10 = vmul.f32 0.01, %v665_v9 }
 0x2cf   : > { %v671_v11 = vsel %vm667_vm14, %v665_v9, %v669_v10 }
 0x2d0   : > { %676 = vrot.lane.b32.xlu1 %v671_v11, %s1173_s17 }
 0x338   : > { %v675_v12 = vpop.permute.xlu0 %674 }
 0x342   : > { %v677_v13 = vpop.permute.xlu1 %676 }
 0x343   : > { %v679_v14 = vsel %vm678_vm15, %v675_v12, %v677_v13 }
 0x344   : > { %681 = vst [vmem:[%s335_s13] sm:$0xff] %v679_v14 }
 0x345   : > { %1065 = shalt.err (!%p1062_p5)
}
 0x346   : > { %863 = dma.vmem_to_hbm [thread:$0]  (%p1327_p8), %s698_s26, 128, %s700_s11, %s683_s28  }
 0x347 PF: > { %p880_p6 = scmp.ge.s32.totalorder %s1165_s7, 2  ;;  %s711_s24 = sand.u32 1, %s1125_s21  }
 0x348   : > { %s712_s18 = scalar_lea.sflag [#allocation4], %s711_s24 }
 0x349   : > { %p874_p13 = pnand %p880_p6, %p1331_p9 }
 0x34b   : > { %p875_p4 = pneg %p874_p13 }
 0x34d   : > { %1119 = dma.done.wait (%p875_p4), %s712_s18, 128  }
 0x34e   : > { %1121 = vsyncadd (%p875_p4), %s712_s18, 4294967168  ;;  %s23_s7 = sadd.s32 1, %s1165_s7   ;;  %s1529_s19 = sld [smem:[#allocation11_spill]] }
 0x34f   : > { %p20_p7 = scmp.ge.s32.totalorder %s23_s7, 6   ;;  %s1530_s23 = sld [smem:[#allocation17_spill]] }
 0x350   : > { %s1531_s8 = sld [smem:[#allocation12_spill]]  ;;  %s1536_s21 = smov %s1129_s22 }
 0x351   : > { %s1532_s26 = sld [smem:[#allocation16_spill]]  ;;  %s1538_s24 = smov %s1141_s25 }
 0x352   : > { %s1533_s27 = sld [smem:[#allocation13_spill]]  ;;  %s1540_s28 = smov %s1161_s30 }
 0x353   : > { %s1534_s29 = sld [smem:[#allocation14_spill]] }
 0x354   : > { %s1535_s9 = sld [smem:[#allocation15_spill]]  ;;  %s1537_s22 = smov %s1529_s19 }
 0x356   : > { %s1539_s25 = smov %s1531_s8  ;;  %22 = sbr.rel (!%p20_p7) target bundleno = 13 (0xd), region = 100 }
 0x35a   : > { %s1541_s30 = smov %s1535_s9 }
 0x35b   :  { %718 = vsyncpa [#allocation3], 1 }
 0x35c   :  { %720 = vsyncpa [#allocation3 + $0x1], 1 }
 0x35d   :  { %721 = vsyncpa [#allocation6], 1 }
 0x35e   :  { %722 = vsyncpa [#allocation4], 1 }
 0x35f   :  { %724 = vsyncpa [#allocation4 + $0x1], 1 }

</bundles_post_ra>
